<compile_context>
chip_gen: v7x
topology: tpu7x:2x2x1
jax: 0.10.0
libtpu: 0.0.40
codegen_flags: <defaults>
</compile_context>

<pallas_src>
import functools

import jax
import jax.numpy as jnp
from jax import lax
from jax.experimental import pallas as pl
from jax.experimental.pallas import tpu as pltpu


# ----------------------------------------------------------------------------
# Small helpers
# ----------------------------------------------------------------------------
def _round_up(x, m):
    return ((x + m - 1) // m) * m


def _cdiv(a, b):
    return -(-a // b)


def _choose_tile(num_edges, max_tm=2048):
    """Pick the lane tile tm and padded edge count e_pad."""
    e128 = _round_up(max(num_edges, 1), 128)
    n_tiles = max(1, _cdiv(e128, max_tm))
    if n_tiles == 1 and e128 > 128:
        n_tiles = 2          # keep >=2 grid steps so v7x's two TensorCores both get work
    tm = _round_up(_cdiv(e128, n_tiles), 128)
    e_pad = tm * _cdiv(e128, tm)
    return tm, e_pad


def _ln_tanh(z, gamma, beta):
    """Feature-major LayerNorm + Tanh.  z: (H, tm); stats reduce over axis 0 (f32)."""
    mean = jnp.mean(z, axis=0, keepdims=True)
    var = jnp.mean(jnp.square(z - mean), axis=0, keepdims=True)
    return jnp.tanh((z - mean) * lax.rsqrt(var + 1e-5) * gamma + beta)


# ----------------------------------------------------------------------------
# Wrapper: adaptive tiling, transposed (edge-on-lanes) layout, in-kernel gather.
# ----------------------------------------------------------------------------
def edge_network_pallas(x, edge_index, params, *, max_tm=2048,
                        mm_dtype=jnp.float32, gather_in_kernel=None):
    """x: [N, D] float, edge_index: [2, E] int  ->  [E] f32 edge scores."""
    num_nodes, input_dim = x.shape
    num_edges = edge_index.shape[1]
    two_d, hidden = params["w1"].shape

    tm, e_pad = _choose_tile(num_edges, max_tm)
    grid = (e_pad // tm,)

    n_pad = _round_up(num_nodes, 8)
    if gather_in_kernel is None:
        # The fused gather needs two (n_pad, tm) f32 one-hot temporaries per step;
        # only use it when those (plus the resident x^T) stay small.
        gather_in_kernel = (2 * n_pad * tm * 4) <= (4 << 20) and n_pad <= 4096

    # Pack all small per-layer vectors into ONE (H, 11) operand (single tiny DMA):
    #   cols 0..8 : b1,g1,be1, b2,g2,be2, b3,g3,be3 ; col 9 : w4 ; [0, 10] : b4
    vec = jnp.zeros((hidden, 11), jnp.float32)
    vec = (vec.at[:, 0].set(params["b1"]).at[:, 1].set(params["g1"]).at[:, 2].set(params["be1"])
              .at[:, 3].set(params["b2"]).at[:, 4].set(params["g2"]).at[:, 5].set(params["be2"])
              .at[:, 6].set(params["b3"]).at[:, 7].set(params["g3"]).at[:, 8].set(params["be3"])
              .at[:, 9].set(params["w4"][:, 0])
              .at[0, 10].set(params["b4"][0]))

    w2t = params["w2"].T.astype(jnp.float32)            # (H, H)
    w3t = params["w3"].T.astype(jnp.float32)            # (H, H)

    def mm(a, b):
        # Optional bf16 MXU operands (v6e/v7x); accumulation always f32.
        return jnp.dot(a.astype(mm_dtype), b.astype(mm_dtype),
                       preferred_element_type=jnp.float32)

    def mlp_tail(z1, w2t_v, w3t_v, vec_v):
        h = _ln_tanh(z1, vec_v[:, 1:2], vec_v[:, 2:3])
        z = mm(w2t_v, h) + vec_v[:, 3:4]
        h = _ln_tanh(z, vec_v[:, 4:5], vec_v[:, 5:6])
        z = mm(w3t_v, h) + vec_v[:, 6:7]
        h = _ln_tanh(z, vec_v[:, 7:8], vec_v[:, 8:9])
        # Final Linear(H -> 1): VPU multiply + sublane reduce -> lane-dense (1, tm).
        return jnp.sum(h * vec_v[:, 9:10], axis=0, keepdims=True) + vec_v[0:1, 10:11]

    if gather_in_kernel:
        # ---- fused-gather path: x^T resident in VMEM, indices streamed -------
        idx = jnp.pad(edge_index.astype(jnp.int32),
                      ((0, 0), (0, e_pad - num_edges)))            # (2, e_pad)
        xt = jnp.pad(x.astype(jnp.float32).T,
                     ((0, 0), (0, n_pad - num_nodes)))             # (D, n_pad)
        w1at = params["w1"][:input_dim].T.astype(jnp.float32)      # (H, D) start half
        w1bt = params["w1"][input_dim:].T.astype(jnp.float32)      # (H, D) end half

        def kernel(idx_ref, xt_ref, w1at_ref, w1bt_ref, w2t_ref, w3t_ref,
                   vec_ref, out_ref):
            idx_v = idx_ref[...]                                   # (2, tm) int32
            node_iota = lax.broadcasted_iota(jnp.int32, (n_pad, tm), 0)
            oh_s = (node_iota == idx_v[0:1, :]).astype(jnp.float32)   # (n_pad, tm)
            oh_e = (node_iota == idx_v[1:2, :]).astype(jnp.float32)
            xt_v = xt_ref[...]                                     # (D, n_pad)
            # One-hot gather on the MXU (exact in f32) -> (D, tm) edge halves.
            xs = jnp.dot(xt_v, oh_s, preferred_element_type=jnp.float32)
            xe = jnp.dot(xt_v, oh_e, preferred_element_type=jnp.float32)
            vec_v = vec_ref[...]
            z1 = mm(w1at_ref[...], xs) + mm(w1bt_ref[...], xe) + vec_v[:, 0:1]
            out_ref[...] = mlp_tail(z1, w2t_ref[...], w3t_ref[...], vec_v)

        in_specs = [
            pl.BlockSpec((2, tm), lambda i: (0, i)),               # edge-index tile
            pl.BlockSpec((input_dim, n_pad), lambda i: (0, 0)),    # x^T   (resident)
            pl.BlockSpec((hidden, input_dim), lambda i: (0, 0)),   # w1a^T (resident)
            pl.BlockSpec((hidden, input_dim), lambda i: (0, 0)),   # w1b^T (resident)
            pl.BlockSpec((hidden, hidden), lambda i: (0, 0)),      # w2^T  (resident)
            pl.BlockSpec((hidden, hidden), lambda i: (0, 0)),      # w3^T  (resident)
            pl.BlockSpec((hidden, 11), lambda i: (0, 0)),          # packed vectors
        ]
        operands = (idx, xt, w1at, w1bt, w2t, w3t, vec)
        flops = e_pad * (4 * n_pad * input_dim + 2 * two_d * hidden
                         + 4 * hidden * hidden + 2 * hidden)
        bytes_accessed = 4 * (2 * e_pad + input_dim * n_pad + 2 * hidden * input_dim
                              + 2 * hidden * hidden + 11 * hidden + e_pad)
        resident_bytes = 4 * (input_dim * n_pad + 2 * hidden * input_dim
                              + 2 * hidden * hidden + 11 * hidden)
        stream_bytes = 4 * (2 * tm + tm)                           # idx tile + out tile
        work_bytes = 4 * (2 * n_pad * tm + 8 * hidden * tm)        # one-hots + activations
    else:
        # ---- large-node-table fallback: wrapper gather, still edge-on-lanes ----
        # TODO(synk): for huge graphs a manual per-row DMA gather from HBM-resident x
        # would remove this [2D, E] HBM round trip too; not implemented here.
        start, end = edge_index[0], edge_index[1]
        edge_t = jnp.concatenate(
            [jnp.take(x, start, axis=0), jnp.take(x, end, axis=0)], axis=1
        ).T.astype(jnp.float32)                                    # (2D, E)
        edge_t = jnp.pad(edge_t, ((0, 0), (0, e_pad - num_edges)))
        w1t = params["w1"].T.astype(jnp.float32)                   # (H, 2D)

        def kernel(xin_ref, w1t_ref, w2t_ref, w3t_ref, vec_ref, out_ref):
            vec_v = vec_ref[...]
            z1 = mm(w1t_ref[...], xin_ref[...]) + vec_v[:, 0:1]
            out_ref[...] = mlp_tail(z1, w2t_ref[...], w3t_ref[...], vec_v)

        in_specs = [
            pl.BlockSpec((two_d, tm), lambda i: (0, i)),           # edge-input tile
            pl.BlockSpec((hidden, two_d), lambda i: (0, 0)),       # w1^T (resident)
            pl.BlockSpec((hidden, hidden), lambda i: (0, 0)),      # w2^T (resident)
            pl.BlockSpec((hidden, hidden), lambda i: (0, 0)),      # w3^T (resident)
            pl.BlockSpec((hidden, 11), lambda i: (0, 0)),          # packed vectors
        ]
        operands = (edge_t, w1t, w2t, w3t, vec)
        flops = e_pad * (2 * two_d * hidden + 4 * hidden * hidden + 2 * hidden)
        bytes_accessed = 4 * (two_d * e_pad + two_d * hidden
                              + 2 * hidden * hidden + 11 * hidden + e_pad)
        resident_bytes = 4 * (two_d * hidden + 2 * hidden * hidden + 11 * hidden)
        stream_bytes = 4 * (two_d * tm + tm)
        work_bytes = 4 * (8 * hidden * tm)

    transcendentals = e_pad * (3 * hidden + 3)                     # tanh + rsqrt
    cost = pl.CostEstimate(flops=int(flops), transcendentals=int(transcendentals),
                           bytes_accessed=int(bytes_accessed))

    # Right-sized scoped-VMEM request: resident weights + double-buffered I/O tiles
    # + in-flight temporaries, with generous headroom (well under v7x's 64 MiB).
    vmem_limit = 2 * resident_bytes + 2 * stream_bytes + work_bytes
    vmem_limit = int(min(64 << 20, max(8 << 20, 3 * vmem_limit + (2 << 20))))

    out = pl.pallas_call(
        kernel,
        out_shape=jax.ShapeDtypeStruct((1, e_pad), jnp.float32),
        grid=grid,
        in_specs=in_specs,
        out_specs=pl.BlockSpec((1, tm), lambda i: (0, i)),         # lane-dense output
        compiler_params=pltpu.CompilerParams(
            dimension_semantics=("parallel",),
            vmem_limit_bytes=vmem_limit,
        ),
        cost_estimate=cost,
    )(*operands)

    return out[0, :num_edges]


# ----------------------------------------------------------------------------
# Deterministic parameter init (mirrors nn.Linear / nn.LayerNorm defaults).
# ----------------------------------------------------------------------------
def init_params(key, input_dim, hidden_dim):
    fan_ins = [2 * input_dim, hidden_dim, hidden_dim, hidden_dim]
    fan_outs = [hidden_dim, hidden_dim, hidden_dim, 1]
    keys = jax.random.split(key, 8)

    def linear(kw, kb, fi, fo):
        bound = 1.0 / jnp.sqrt(jnp.float32(fi))
        w = jax.random.uniform(kw, (fi, fo), jnp.float32, -bound, bound)
        b = jax.random.uniform(kb, (fo,), jnp.float32, -bound, bound)
        return w, b

    p = {}
    p["w1"], p["b1"] = linear(keys[0], keys[1], fan_ins[0], fan_outs[0])
    p["g1"] = jnp.ones((hidden_dim,), jnp.float32)
    p["be1"] = jnp.zeros((hidden_dim,), jnp.float32)
    p["w2"], p["b2"] = linear(keys[2], keys[3], fan_ins[1], fan_outs[1])
    p["g2"] = jnp.ones((hidden_dim,), jnp.float32)
    p["be2"] = jnp.zeros((hidden_dim,), jnp.float32)
    p["w3"], p["b3"] = linear(keys[4], keys[5], fan_ins[2], fan_outs[2])
    p["g3"] = jnp.ones((hidden_dim,), jnp.float32)
    p["be3"] = jnp.zeros((hidden_dim,), jnp.float32)
    p["w4"], p["b4"] = linear(keys[6], keys[7], fan_ins[3], fan_outs[3])
    return p


# ----------------------------------------------------------------------------
# Pure-JAX reference (mirrors the PyTorch forward) for verification.
# ----------------------------------------------------------------------------
def edge_network_ref(x, edge_index, params):
    start, end = edge_index[0], edge_index[1]
    h = jnp.concatenate([x[start], x[end]], axis=1)

    def layer_norm(z, g, b):
        mean = jnp.mean(z, axis=-1, keepdims=True)
        var = jnp.mean((z - mean) ** 2, axis=-1, keepdims=True)
        return (z - mean) * lax.rsqrt(var + 1e-5) * g + b

    h = jnp.tanh(layer_norm(h @ params["w1"] + params["b1"], params["g1"], params["be1"]))
    h = jnp.tanh(layer_norm(h @ params["w2"] + params["b2"], params["g2"], params["be2"]))
    h = jnp.tanh(layer_norm(h @ params["w3"] + params["b3"], params["g3"], params["be3"]))
    return (h @ params["w4"] + params["b4"]).squeeze(-1)


if __name__ == "__main__":
    key = jax.random.PRNGKey(0)
    k_x, k_s, k_t, k_p = jax.random.split(key, 4)

    num_nodes = 24     # N
    input_dim = 8      # per-node feature dim D (edge input = 2*D = 16)
    hidden_dim = 32    # hidden width H of the edge MLP
    num_edges = 40     # E

    x = jax.random.normal(k_x, (num_nodes, input_dim), jnp.float32)
    edge_index = jnp.stack([
        jax.random.randint(k_s, (num_edges,), 0, num_nodes),
        jax.random.randint(k_t, (num_edges,), 0, num_nodes),
    ]).astype(jnp.int32)

    params = init_params(k_p, input_dim, hidden_dim)
    ref = edge_network_ref(x, edge_index, params)

    # Fused in-kernel gather path (auto-selected: node table fits VMEM).
    out = jax.block_until_ready(edge_network_pallas(x, edge_index, params))
    assert out.shape == (num_edges,)
    assert jnp.allclose(out, ref, atol=1e-4, rtol=1e-4), "fused-gather path mismatch"

    # Large-node-table fallback path (wrapper gather, transposed layout).
    out2 = jax.block_until_ready(
        edge_network_pallas(x, edge_index, params, gather_in_kernel=False))
    assert jnp.allclose(out2, ref, atol=1e-4, rtol=1e-4), "pre-gathered path mismatch"

    print("KERNEL_OK")
</pallas_src>

<mosaic_0001>
module attributes {stable_mosaic.version = 11 : i64} {
  func.func @kernel(%arg0: i32, %arg1: memref<2x128xi32, #tpu.memory_space<vmem>>, %arg2: memref<8x24xf32, #tpu.memory_space<vmem>>, %arg3: memref<32x8xf32, #tpu.memory_space<vmem>>, %arg4: memref<32x8xf32, #tpu.memory_space<vmem>>, %arg5: memref<32x32xf32, #tpu.memory_space<vmem>>, %arg6: memref<32x32xf32, #tpu.memory_space<vmem>>, %arg7: memref<32x11xf32, #tpu.memory_space<vmem>>, %arg8: memref<1x128xf32, #tpu.memory_space<vmem>>) attributes {dimension_semantics = [#tpu.dimension_semantics<parallel>], iteration_bounds = array<i64: 1>, scalar_prefetch = 0 : i64, scratch_operands = 0 : i64, tpu.core_type = #tpu.core_type<tc>, window_params = [{transform_indices = @transform_0, window_bounds = array<i64: 2, 128>}, {pipeline_mode = #tpu.pipeline_mode<synchronous>, transform_indices = @transform_1, window_bounds = array<i64: 8, 24>}, {pipeline_mode = #tpu.pipeline_mode<synchronous>, transform_indices = @transform_2, window_bounds = array<i64: 32, 8>}, {pipeline_mode = #tpu.pipeline_mode<synchronous>, transform_indices = @transform_3, window_bounds = array<i64: 32, 8>}, {pipeline_mode = #tpu.pipeline_mode<synchronous>, transform_indices = @transform_4, window_bounds = array<i64: 32, 32>}, {pipeline_mode = #tpu.pipeline_mode<synchronous>, transform_indices = @transform_5, window_bounds = array<i64: 32, 32>}, {pipeline_mode = #tpu.pipeline_mode<synchronous>, transform_indices = @transform_6, window_bounds = array<i64: 32, 11>}, {transform_indices = @transform_7, window_bounds = array<i64: 1, 128>}]} {
    %c0 = arith.constant 0 : index
    %c0_0 = arith.constant 0 : index
    %0 = vector.load %arg1[%c0, %c0_0] : memref<2x128xi32, #tpu.memory_space<vmem>>, vector<2x128xi32>
    %1 = tpu.iota {dimensions = array<i32: 0>} : vector<24x128xi32>
    %2 = vector.extract_strided_slice %0 {offsets = [0, 0], sizes = [1, 128], strides = [1, 1]} : vector<2x128xi32> to vector<1x128xi32>
    %3 = vector.broadcast %2 : vector<1x128xi32> to vector<24x128xi32>
    %4 = arith.cmpi eq, %1, %3 : vector<24x128xi32>
    %5 = arith.extui %4 : vector<24x128xi1> to vector<24x128xi32>
    %6 = arith.sitofp %5 : vector<24x128xi32> to vector<24x128xf32>
    %7 = vector.extract_strided_slice %0 {offsets = [1, 0], sizes = [1, 128], strides = [1, 1]} : vector<2x128xi32> to vector<1x128xi32>
    %8 = vector.broadcast %7 : vector<1x128xi32> to vector<24x128xi32>
    %9 = arith.cmpi eq, %1, %8 : vector<24x128xi32>
    %10 = arith.extui %9 : vector<24x128xi1> to vector<24x128xi32>
    %11 = arith.sitofp %10 : vector<24x128xi32> to vector<24x128xf32>
    %c0_1 = arith.constant 0 : index
    %c0_2 = arith.constant 0 : index
    %12 = vector.load %arg2[%c0_1, %c0_2] : memref<8x24xf32, #tpu.memory_space<vmem>>, vector<8x24xf32>
    %cst = arith.constant dense<0.000000e+00> : vector<8x128xf32>
    %13 = tpu.matmul %12, %6, %cst {dimension_numbers = #tpu.dot_dimension_numbers<[1], [0], [0], [1], [0, 0, 1, 1], [], []>} : vector<8x24xf32>, vector<24x128xf32>, vector<8x128xf32> -> vector<8x128xf32>
    %cst_3 = arith.constant dense<0.000000e+00> : vector<8x128xf32>
    %14 = tpu.matmul %12, %11, %cst_3 {dimension_numbers = #tpu.dot_dimension_numbers<[1], [0], [0], [1], [0, 0, 1, 1], [], []>} : vector<8x24xf32>, vector<24x128xf32>, vector<8x128xf32> -> vector<8x128xf32>
    %c0_4 = arith.constant 0 : index
    %c0_5 = arith.constant 0 : index
    %15 = vector.load %arg7[%c0_4, %c0_5] : memref<32x11xf32, #tpu.memory_space<vmem>>, vector<32x11xf32>
    %c0_6 = arith.constant 0 : index
    %c0_7 = arith.constant 0 : index
    %16 = vector.load %arg3[%c0_6, %c0_7] : memref<32x8xf32, #tpu.memory_space<vmem>>, vector<32x8xf32>
    %cst_8 = arith.constant dense<0.000000e+00> : vector<32x128xf32>
    %17 = tpu.matmul %16, %13, %cst_8 {dimension_numbers = #tpu.dot_dimension_numbers<[1], [0], [0], [1], [0, 0, 1, 1], [], []>} : vector<32x8xf32>, vector<8x128xf32>, vector<32x128xf32> -> vector<32x128xf32>
    %c0_9 = arith.constant 0 : index
    %c0_10 = arith.constant 0 : index
    %18 = vector.load %arg4[%c0_9, %c0_10] : memref<32x8xf32, #tpu.memory_space<vmem>>, vector<32x8xf32>
    %cst_11 = arith.constant dense<0.000000e+00> : vector<32x128xf32>
    %19 = tpu.matmul %18, %14, %cst_11 {dimension_numbers = #tpu.dot_dimension_numbers<[1], [0], [0], [1], [0, 0, 1, 1], [], []>} : vector<32x8xf32>, vector<8x128xf32>, vector<32x128xf32> -> vector<32x128xf32>
    %20 = arith.addf %17, %19 : vector<32x128xf32>
    %21 = vector.extract_strided_slice %15 {offsets = [0, 0], sizes = [32, 1], strides = [1, 1]} : vector<32x11xf32> to vector<32x1xf32>
    %22 = vector.broadcast %21 : vector<32x1xf32> to vector<32x128xf32>
    %23 = arith.addf %20, %22 : vector<32x128xf32>
    %c0_12 = arith.constant 0 : index
    %c0_13 = arith.constant 0 : index
    %24 = vector.load %arg5[%c0_12, %c0_13] : memref<32x32xf32, #tpu.memory_space<vmem>>, vector<32x32xf32>
    %c0_14 = arith.constant 0 : index
    %c0_15 = arith.constant 0 : index
    %25 = vector.load %arg6[%c0_14, %c0_15] : memref<32x32xf32, #tpu.memory_space<vmem>>, vector<32x32xf32>
    %26 = vector.extract_strided_slice %15 {offsets = [0, 1], sizes = [32, 1], strides = [1, 1]} : vector<32x11xf32> to vector<32x1xf32>
    %27 = vector.extract_strided_slice %15 {offsets = [0, 2], sizes = [32, 1], strides = [1, 1]} : vector<32x11xf32> to vector<32x1xf32>
    %cst_16 = arith.constant dense<0.000000e+00> : vector<128xf32>
    %28 = vector.multi_reduction <add>, %23, %cst_16 [0] : vector<32x128xf32> to vector<128xf32>
    %29 = vector.shape_cast %28 : vector<128xf32> to vector<1x128xf32>
    %cst_17 = arith.constant 3.200000e+01 : f32
    %30 = vector.broadcast %cst_17 : f32 to vector<1x128xf32>
    %31 = arith.divf %29, %30 : vector<1x128xf32>
    %32 = vector.broadcast %31 : vector<1x128xf32> to vector<32x128xf32>
    %33 = arith.subf %23, %32 : vector<32x128xf32>
    %34 = arith.mulf %33, %33 : vector<32x128xf32>
    %cst_18 = arith.constant dense<0.000000e+00> : vector<128xf32>
    %35 = vector.multi_reduction <add>, %34, %cst_18 [0] : vector<32x128xf32> to vector<128xf32>
    %36 = vector.shape_cast %35 : vector<128xf32> to vector<1x128xf32>
    %cst_19 = arith.constant 3.200000e+01 : f32
    %37 = vector.broadcast %cst_19 : f32 to vector<1x128xf32>
    %38 = arith.divf %36, %37 : vector<1x128xf32>
    %39 = vector.broadcast %31 : vector<1x128xf32> to vector<32x128xf32>
    %40 = arith.subf %23, %39 : vector<32x128xf32>
    %cst_20 = arith.constant 9.99999974E-6 : f32
    %41 = vector.broadcast %cst_20 : f32 to vector<1x128xf32>
    %42 = arith.addf %38, %41 : vector<1x128xf32>
    %43 = math.rsqrt %42 : vector<1x128xf32>
    %44 = vector.broadcast %43 : vector<1x128xf32> to vector<32x128xf32>
    %45 = arith.mulf %40, %44 : vector<32x128xf32>
    %46 = vector.broadcast %26 : vector<32x1xf32> to vector<32x128xf32>
    %47 = arith.mulf %45, %46 : vector<32x128xf32>
    %48 = vector.broadcast %27 : vector<32x1xf32> to vector<32x128xf32>
    %49 = arith.addf %47, %48 : vector<32x128xf32>
    %50 = math.tanh %49 : vector<32x128xf32>
    %cst_21 = arith.constant dense<0.000000e+00> : vector<32x128xf32>
    %51 = tpu.matmul %24, %50, %cst_21 {dimension_numbers = #tpu.dot_dimension_numbers<[1], [0], [0], [1], [0, 0, 1, 1], [], []>} : vector<32x32xf32>, vector<32x128xf32>, vector<32x128xf32> -> vector<32x128xf32>
    %52 = vector.extract_strided_slice %15 {offsets = [0, 3], sizes = [32, 1], strides = [1, 1]} : vector<32x11xf32> to vector<32x1xf32>
    %53 = vector.broadcast %52 : vector<32x1xf32> to vector<32x128xf32>
    %54 = arith.addf %51, %53 : vector<32x128xf32>
    %55 = vector.extract_strided_slice %15 {offsets = [0, 4], sizes = [32, 1], strides = [1, 1]} : vector<32x11xf32> to vector<32x1xf32>
    %56 = vector.extract_strided_slice %15 {offsets = [0, 5], sizes = [32, 1], strides = [1, 1]} : vector<32x11xf32> to vector<32x1xf32>
    %cst_22 = arith.constant dense<0.000000e+00> : vector<128xf32>
    %57 = vector.multi_reduction <add>, %54, %cst_22 [0] : vector<32x128xf32> to vector<128xf32>
    %58 = vector.shape_cast %57 : vector<128xf32> to vector<1x128xf32>
    %cst_23 = arith.constant 3.200000e+01 : f32
    %59 = vector.broadcast %cst_23 : f32 to vector<1x128xf32>
    %60 = arith.divf %58, %59 : vector<1x128xf32>
    %61 = vector.broadcast %60 : vector<1x128xf32> to vector<32x128xf32>
    %62 = arith.subf %54, %61 : vector<32x128xf32>
    %63 = arith.mulf %62, %62 : vector<32x128xf32>
    %cst_24 = arith.constant dense<0.000000e+00> : vector<128xf32>
    %64 = vector.multi_reduction <add>, %63, %cst_24 [0] : vector<32x128xf32> to vector<128xf32>
    %65 = vector.shape_cast %64 : vector<128xf32> to vector<1x128xf32>
    %cst_25 = arith.constant 3.200000e+01 : f32
    %66 = vector.broadcast %cst_25 : f32 to vector<1x128xf32>
    %67 = arith.divf %65, %66 : vector<1x128xf32>
    %68 = vector.broadcast %60 : vector<1x128xf32> to vector<32x128xf32>
    %69 = arith.subf %54, %68 : vector<32x128xf32>
    %cst_26 = arith.constant 9.99999974E-6 : f32
    %70 = vector.broadcast %cst_26 : f32 to vector<1x128xf32>
    %71 = arith.addf %67, %70 : vector<1x128xf32>
    %72 = math.rsqrt %71 : vector<1x128xf32>
    %73 = vector.broadcast %72 : vector<1x128xf32> to vector<32x128xf32>
    %74 = arith.mulf %69, %73 : vector<32x128xf32>
    %75 = vector.broadcast %55 : vector<32x1xf32> to vector<32x128xf32>
    %76 = arith.mulf %74, %75 : vector<32x128xf32>
    %77 = vector.broadcast %56 : vector<32x1xf32> to vector<32x128xf32>
    %78 = arith.addf %76, %77 : vector<32x128xf32>
    %79 = math.tanh %78 : vector<32x128xf32>
    %cst_27 = arith.constant dense<0.000000e+00> : vector<32x128xf32>
    %80 = tpu.matmul %25, %79, %cst_27 {dimension_numbers = #tpu.dot_dimension_numbers<[1], [0], [0], [1], [0, 0, 1, 1], [], []>} : vector<32x32xf32>, vector<32x128xf32>, vector<32x128xf32> -> vector<32x128xf32>
    %81 = vector.extract_strided_slice %15 {offsets = [0, 6], sizes = [32, 1], strides = [1, 1]} : vector<32x11xf32> to vector<32x1xf32>
    %82 = vector.broadcast %81 : vector<32x1xf32> to vector<32x128xf32>
    %83 = arith.addf %80, %82 : vector<32x128xf32>
    %84 = vector.extract_strided_slice %15 {offsets = [0, 7], sizes = [32, 1], strides = [1, 1]} : vector<32x11xf32> to vector<32x1xf32>
    %85 = vector.extract_strided_slice %15 {offsets = [0, 8], sizes = [32, 1], strides = [1, 1]} : vector<32x11xf32> to vector<32x1xf32>
    %cst_28 = arith.constant dense<0.000000e+00> : vector<128xf32>
    %86 = vector.multi_reduction <add>, %83, %cst_28 [0] : vector<32x128xf32> to vector<128xf32>
    %87 = vector.shape_cast %86 : vector<128xf32> to vector<1x128xf32>
    %cst_29 = arith.constant 3.200000e+01 : f32
    %88 = vector.broadcast %cst_29 : f32 to vector<1x128xf32>
    %89 = arith.divf %87, %88 : vector<1x128xf32>
    %90 = vector.broadcast %89 : vector<1x128xf32> to vector<32x128xf32>
    %91 = arith.subf %83, %90 : vector<32x128xf32>
    %92 = arith.mulf %91, %91 : vector<32x128xf32>
    %cst_30 = arith.constant dense<0.000000e+00> : vector<128xf32>
    %93 = vector.multi_reduction <add>, %92, %cst_30 [0] : vector<32x128xf32> to vector<128xf32>
    %94 = vector.shape_cast %93 : vector<128xf32> to vector<1x128xf32>
    %cst_31 = arith.constant 3.200000e+01 : f32
    %95 = vector.broadcast %cst_31 : f32 to vector<1x128xf32>
    %96 = arith.divf %94, %95 : vector<1x128xf32>
    %97 = vector.broadcast %89 : vector<1x128xf32> to vector<32x128xf32>
    %98 = arith.subf %83, %97 : vector<32x128xf32>
    %cst_32 = arith.constant 9.99999974E-6 : f32
    %99 = vector.broadcast %cst_32 : f32 to vector<1x128xf32>
    %100 = arith.addf %96, %99 : vector<1x128xf32>
    %101 = math.rsqrt %100 : vector<1x128xf32>
    %102 = vector.broadcast %101 : vector<1x128xf32> to vector<32x128xf32>
    %103 = arith.mulf %98, %102 : vector<32x128xf32>
    %104 = vector.broadcast %84 : vector<32x1xf32> to vector<32x128xf32>
    %105 = arith.mulf %103, %104 : vector<32x128xf32>
    %106 = vector.broadcast %85 : vector<32x1xf32> to vector<32x128xf32>
    %107 = arith.addf %105, %106 : vector<32x128xf32>
    %108 = math.tanh %107 : vector<32x128xf32>
    %109 = vector.extract_strided_slice %15 {offsets = [0, 9], sizes = [32, 1], strides = [1, 1]} : vector<32x11xf32> to vector<32x1xf32>
    %110 = vector.broadcast %109 : vector<32x1xf32> to vector<32x128xf32>
    %111 = arith.mulf %108, %110 : vector<32x128xf32>
    %cst_33 = arith.constant dense<0.000000e+00> : vector<128xf32>
    %112 = vector.multi_reduction <add>, %111, %cst_33 [0] : vector<32x128xf32> to vector<128xf32>
    %113 = vector.shape_cast %112 : vector<128xf32> to vector<1x128xf32>
    %114 = vector.extract_strided_slice %15 {offsets = [0, 10], sizes = [1, 1], strides = [1, 1]} : vector<32x11xf32> to vector<1x1xf32>
    %115 = vector.broadcast %114 : vector<1x1xf32> to vector<1x128xf32>
    %116 = arith.addf %113, %115 : vector<1x128xf32>
    %c0_34 = arith.constant 0 : index
    %c0_35 = arith.constant 0 : index
    %117 = vector.load %arg8[%c0_34, %c0_35] : memref<1x128xf32, #tpu.memory_space<vmem>>, vector<1x128xf32>
    tpu.vector_store %arg8[%c0_34, %c0_35], %116 {strides = array<i32>} : memref<1x128xf32, #tpu.memory_space<vmem>>, vector<1x128xf32>,
    return
  }
  func.func @transform_0(%arg0: i32) -> (i32, i32) {
    %c0_i32 = arith.constant 0 : i32
    %c0_i32_0 = arith.constant 0 : i32
    return %c0_i32, %arg0 : i32, i32
  }
  func.func @transform_1(%arg0: i32) -> (i32, i32) {
    %c0_i32 = arith.constant 0 : i32
    %c0_i32_0 = arith.constant 0 : i32
    %c0_i32_1 = arith.constant 0 : i32
    return %c0_i32, %c0_i32_0 : i32, i32
  }
  func.func @transform_2(%arg0: i32) -> (i32, i32) {
    %c0_i32 = arith.constant 0 : i32
    %c0_i32_0 = arith.constant 0 : i32
    %c0_i32_1 = arith.constant 0 : i32
    return %c0_i32, %c0_i32_0 : i32, i32
  }
  func.func @transform_3(%arg0: i32) -> (i32, i32) {
    %c0_i32 = arith.constant 0 : i32
    %c0_i32_0 = arith.constant 0 : i32
    %c0_i32_1 = arith.constant 0 : i32
    return %c0_i32, %c0_i32_0 : i32, i32
  }
  func.func @transform_4(%arg0: i32) -> (i32, i32) {
    %c0_i32 = arith.constant 0 : i32
    %c0_i32_0 = arith.constant 0 : i32
    %c0_i32_1 = arith.constant 0 : i32
    return %c0_i32, %c0_i32_0 : i32, i32
  }
  func.func @transform_5(%arg0: i32) -> (i32, i32) {
    %c0_i32 = arith.constant 0 : i32
    %c0_i32_0 = arith.constant 0 : i32
    %c0_i32_1 = arith.constant 0 : i32
    return %c0_i32, %c0_i32_0 : i32, i32
  }
  func.func @transform_6(%arg0: i32) -> (i32, i32) {
    %c0_i32 = arith.constant 0 : i32
    %c0_i32_0 = arith.constant 0 : i32
    %c0_i32_1 = arith.constant 0 : i32
    return %c0_i32, %c0_i32_0 : i32, i32
  }
  func.func @transform_7(%arg0: i32) -> (i32, i32) {
    %c0_i32 = arith.constant 0 : i32
    %c0_i32_0 = arith.constant 0 : i32
    return %c0_i32, %arg0 : i32, i32
  }
}

</mosaic_0001>

<bundles_post_ra>
// kernel: tpu_custom_call.1
= control target key start
LH: loop header
LB: loop body
LE: loop exit
PB: predicated region body
PF: predicated region fallthrough
CT: control target
= control target key end

     0   :  { %v28_v0 = vlaneseq  ;;  %v1204_v1 = vmov 0.0|0.0   ;;  %s1404_s0 = inlined_call_operand.vmem [shape: s32[2,128], index: 0, kind: input, shape index: {}]   ;;  %s1405_s1 = inlined_call_operand.vmem [shape: f32[8,24], index: 1, kind: input, shape index: {}]   ;;  %s1406_s2 = inlined_call_operand.vmem [shape: f32[32,8], index: 2, kind: input, shape index: {}]   ;;  %s1407_s3 = inlined_call_operand.vmem [shape: f32[32,8], index: 3, kind: input, shape index: {}]   ;;  %s1408_s4 = inlined_call_operand.vmem [shape: f32[32,32], index: 4, kind: input, shape index: {}]   ;;  %s1409_s5 = inlined_call_operand.vmem [shape: f32[32,32], index: 5, kind: input, shape index: {}]   ;;  %s1410_s6 = inlined_call_operand.vmem [shape: f32[32,11], index: 6, kind: input, shape index: {}]   ;;  %s1411_s7 = inlined_call_operand.hbm [shape: f32[1,128], index: 7, kind: output, shape index: {}]  }
   0x1   :  { %1082 = vmatprep.subr.bf16.mxu1 %v1204_v1  ;;  %1079 = vmatprep.subr.bf16.mxu0 %v1204_v1 }
   0x2   :  { %12 = vsyncpa [#allocation3], 0  ;;  %v29_v2 = vshrl.u32 %v28_v0, 7  ;;  %vm1205_vm0 = vmmov 0   ;;  %v1206_v3 = vmov 0.0   ;;  %v58_v12 = vld [vmem:[%s1405_s1] sm:$0xff] }
   0x3   :  { %1032 = vmatprep.mubr.msk.f32.mxu1 %vm1205_vm0, %v1206_v3  ;;  %1023 = vmatprep.mubr.msk.f32.mxu0 %vm1205_vm0, %v1206_v3  ;;  %v27_v4 = vld [vmem:[%s1404_s0] sm:$0x3]  ;;  %v1207_v11 = vmov 1.0|1.0   ;;  %vm59_vm8 = vcmask 195584   ;;  %v1208_v13 = vmov 1.0  }
   0x4   :  { %v30_v5 = vadd.s32 8, %v29_v2  ;;  %v47_v6 = vsub.s32 1, %v29_v2  ;;  %v34_v7 = vsub.s32 0, %v29_v2  ;;  %v31_v10 = vadd.s32 16, %v29_v2  ;;  %v211_v14 = vld [vmem:[%s1407_s3] sm:$0xff]  ;;  %v1279_v16 = vld [vmem:[%s1410_s6 + $0x10] sm:$0xff] }
   0x5   :  { %vm215_vm10 = vcmask 64512   ;;  %v1274_v15 = vld [vmem:[%s1410_s6] sm:$0xff]  ;;  %v1209_v17 = vmov 0   ;;  %v1286_v18 = vld [vmem:[%s1410_s6 + $0x8] sm:$0xff]  ;;  %v1291_v19 = vld [vmem:[%s1410_s6 + $0x18] sm:$0xff]  ;;  %v1210_v20 = vmov 1  }
   0x6   :  { %v48_v8 = vrot.slane %v27_v4, %v47_v6  ;;  %v35_v9 = vrot.slane %v27_v4, %v34_v7  ;;  %1122 = vset.pattern.permute.xlu0 %v1209_v17  ;;  %1123 = vset.pattern.permute.xlu1 %v1209_v17  ;;  %v1211_v21 = vmov 2   ;;  %v212_v23 = vld [vmem:[%s1407_s3 + $0x8] sm:$0xff]  ;;  %v213_v26 = vld [vmem:[%s1407_s3 + $0x10] sm:$0xff]  ;;  %v214_v28 = vld [vmem:[%s1407_s3 + $0x18] sm:$0xff]  ;;  %vm537_vm11 = vcmask 261120  }
   0x7   :  { %412 = vperm.xlu0 %1122, %v1274_v15   ;;  %422 = vperm.xlu1 %1123, %v1279_v16   ;;  %v207_v29 = vld [vmem:[%s1406_s2] sm:$0xff]  ;;  %v208_v30 = vld [vmem:[%s1406_s2 + $0x8] sm:$0xff]  ;;  %v209_v31 = vld [vmem:[%s1406_s2 + $0x10] sm:$0xff]  ;;  %v1212_v34 = vmov 3   ;;  %v1213_v35 = vmov 4   ;;  %v1214_v36 = vmov 5  }
   0x8   :  { %vm49_vm1 = vcmp.eq.s32.totalorder %v29_v2, %v48_v8  ;;  %vm50_vm2 = vcmp.eq.s32.totalorder %v30_v5, %v48_v8  ;;  %vm36_vm3 = vcmp.eq.s32.totalorder %v29_v2, %v35_v9  ;;  %vm37_vm4 = vcmp.eq.s32.totalorder %v30_v5, %v35_v9  ;;  %v210_v32 = vld [vmem:[%s1406_s2 + $0x18] sm:$0xff]  ;;  %v434_v33 = vld [vmem:[%s1408_s4] sm:$0xff] }
   0x9   :  { %vm1083_vm5 = vmpackc.low %vm50_vm2, %vm49_vm1  ;;  %vm51_vm7 = vcmp.eq.s32.totalorder %v31_v10, %v48_v8  ;;  %vm38_vm9 = vcmp.eq.s32.totalorder %v31_v10, %v35_v9 }
   0xa   :  { %1084 = vmatpush3.bf16.msk.msra.mxu1 %vm1083_vm5, %v1207_v11  ;;  %vm1080_vm6 = vmpackc.low %vm37_vm4, %vm36_vm3 }
   0xb   :  { %1081 = vmatpush3.bf16.msk.msra.mxu0 %vm1080_vm6, %v1207_v11  ;;  %1030 = vmatprep.subr.mxu1 %v1206_v3 }
   0xc   :  { %1021 = vmatprep.subr.mxu0 %v1206_v3  ;;  %417 = vperm.xlu0 %1122, %v1286_v18  }
   0xd   :  { %427 = vperm.xlu1 %1123, %v1291_v19  }
   0xe   :  { %1031 = vmatpush3.msk.msra.mxu1 %vm51_vm7, %v1208_v13 }
   0xf   :  { %1033 = vmatmul.mubr.msk.f32.vlgmr.msra.gmra.mrb[0].mxu1 %vm59_vm8, %v58_v12  ;;  %1022 = vmatpush3.msk.msra.mxu0 %vm38_vm9, %v1208_v13 }
  0x10   :  { %1024 = vmatmul.mubr.msk.f32.vlgmr.msra.gmra.mrb[0].mxu0 %vm59_vm8, %v58_v12  ;;  %1124 = vset.pattern.permute.xlu0 %v1210_v20 }
  0x11   :  { %1037 = vmatprep.mubr.msk.f32.mxu0 %vm215_vm10, %v211_v14  ;;  %1125 = vset.pattern.permute.xlu1 %v1210_v20 }
  0x12   :  { %482 = vperm.xlu1 %1125, %v1286_v18   ;;  %478 = vperm.xlu0 %1124, %v1274_v15  }
  0x13   :  { %1059 = vmatprep.mubr.msk.f32.mxu1 %vm537_vm11, %v434_v33 }
  0x16   :  { %1126 = vset.pattern.permute.xlu1 %v1211_v21  ;;  %1127 = vset.pattern.permute.xlu0 %v1211_v21 }
  0x17   :  { %498 = vperm.xlu1 %1126, %v1274_v15   ;;  %502 = vperm.xlu0 %1127, %v1286_v18  }
  0x1b   :  { %1128 = vset.pattern.permute.xlu1 %v1210_v20  ;;  %506 = vperm.xlu0 %1127, %v1279_v16  }
  0x1c   :  { %486 = vperm.xlu1 %1128, %v1279_v16  }
  0x1f   :  { %1130 = vset.pattern.permute.xlu0 %v1212_v34 }
  0x20   :  { %490 = vperm.xlu1 %1128, %v1291_v19   ;;  %522 = vperm.xlu0 %1130, %v1274_v15  }
  0x24   :  { %1129 = vset.pattern.permute.xlu1 %v1211_v21  ;;  %534 = vperm.xlu0 %1130, %v1291_v19  }
  0x25   :  { %510 = vperm.xlu1 %1129, %v1291_v19  }
  0x28   :  { %1133 = vset.pattern.permute.xlu0 %v1213_v35 }
  0x29   :  { %1131 = vset.pattern.permute.xlu1 %v1212_v34  ;;  %674 = vperm.xlu0 %1133, %v1286_v18  }
  0x2a   :  { %526 = vperm.xlu1 %1131, %v1286_v18  }
  0x2d   :  { %678 = vperm.xlu0 %1133, %v1279_v16  }
  0x2e   :  { %530 = vperm.xlu1 %1131, %v1279_v16  }
  0x31   :  { %1136 = vset.pattern.permute.xlu0 %v1214_v36 }
  0x32   :  { %1132 = vset.pattern.permute.xlu1 %v1213_v35  ;;  %698 = vperm.xlu0 %1136, %v1279_v16  }
  0x33   :  { %670 = vperm.xlu1 %1132, %v1274_v15  }
  0x37   :  { %1134 = vset.pattern.permute.xlu1 %v1214_v36 }
  0x38   :  { %690 = vperm.xlu1 %1134, %v1274_v15  }
  0x3c   :  { %694 = vperm.xlu1 %1134, %v1286_v18  }
  0x40   :  { %1135 = vset.pattern.permute.xlu1 %v1213_v35 }
  0x41   :  { %682 = vperm.xlu1 %1135, %v1291_v19  }
  0x45   :  { %1137 = vset.pattern.permute.xlu1 %v1214_v36 }
  0x46   :  { %702 = vperm.xlu1 %1137, %v1291_v19  }
  0x86   :  { %v413_v37 = vpop.permute.xlu0 %412  ;;  %v423_v39 = vpop.permute.xlu1 %422 }
  0x8b   :  { %v418_v38 = vpop.permute.xlu0 %417 }
  0x8c   :  { %v428_v46 = vpop.permute.xlu1 %427 }
  0x91   :  { %v483_v8 = vpop.permute.xlu1 %482  ;;  %v479_v21 = vpop.permute.xlu0 %478 }
  0x96   :  { %v499_v13 = vpop.permute.xlu1 %498 }
  0x9b   :  { %v487_v20 = vpop.permute.xlu1 %486 }
  0xe2   :  { %v199_v22 = vpop.f32.mrb[0].mxu1 }
  0xe3   :  { %v1034_v24 = vpop.f32.mrb[1].mxu1  ;;  %1035 = vmatprep.subr.mxu0 %v199_v22  ;;  %v129_v25 = vpop.f32.mrb[0].mxu0 }
  0xe4   :  { %1036 = vmatpush3.msra.mxu0 %v199_v22  ;;  %v1025_v27 = vpop.f32.mrb[1].mxu0  ;;  %v491_v22 = vpop.permute.xlu1 %490 }
  0xe5   :  { %1038 = vmatmul.mubr.msk.f32.vlgmr.msra.gmra.mrb[2].mxu0 %vm215_vm10, %v212_v23  ;;  %1043 = vmatprep.subr.mxu0 %v129_v25  ;;  %v503_v23 = vpop.permute.xlu0 %502 }
  0xe6   :  { %1044 = vmatpush3.msra.mxu0 %v129_v25  ;;  %1040 = vmatprep.mubr.msk.f32.mxu0 %vm215_vm10, %v213_v26 }
  0xe9   :  { %1041 = vmatmul.mubr.msk.f32.gmra.mrb[4].mxu0 %vm215_vm10, %v214_v28  ;;  %v507_v34 = vpop.permute.xlu0 %506 }
  0xea   :  { %1045 = vmatprep.mubr.msk.f32.mxu0 %vm215_vm10, %v207_v29  ;;  %v511_v29 = vpop.permute.xlu1 %510 }
  0xed   :  { %1046 = vmatmul.mubr.msk.f32.vlgmr.msra.gmra.mrb[2].mxu0 %vm215_vm10, %v208_v30 }
  0xee   :  { %1048 = vmatprep.mubr.msk.f32.mxu0 %vm215_vm10, %v209_v31 }
  0xf1   :  { %1049 = vmatmul.mubr.msk.f32.gmra.mrb[4].mxu0 %vm215_vm10, %v210_v32 }
 0x1c0   :  { %v1047_v40 = vpop.f32.mrb[2].mxu0 }
 0x1c1   :  { %v431_v41 = vadd.f32 %v1047_v40, %v418_v38  ;;  %v391_v42 = vpop.f32.mrb[3].mxu0 }
 0x1c2   :  { %v430_v43 = vadd.f32 %v413_v37, %v391_v42 }
 0x1c4   :  { %v442_v44 = vadd.f32 %v431_v41, %v430_v43  ;;  %v1050_v45 = vpop.f32.mrb[4].mxu0 }
 0x1c5   :  { %v401_v47 = vpop.f32.mrb[5].mxu0  ;;  %v433_v49 = vadd.f32 %v1050_v45, %v428_v46  ;;  %v435_v45 = vld [vmem:[%s1408_s4 + $0x8] sm:$0xff]  ;;  %v436_v46 = vld [vmem:[%s1408_s4 + $0x10] sm:$0xff] }
 0x1c6   :  { %v432_v48 = vadd.f32 %v423_v39, %v401_v47  ;;  %v437_v47 = vld [vmem:[%s1408_s4 + $0x18] sm:$0xff] }
 0x1c8   :  { %v443_v50 = vadd.f32 %v442_v44, %v432_v48 }
 0x1ca   :  { %v444_v51 = vadd.f32 %v443_v50, %v433_v49  ;;  %v1216_v50 = vmov 7  }
 0x1cc   :  { %v445_v52 = vrot.slane %v444_v51, 4 }
 0x1ce   :  { %v446_v53 = vadd.f32 %v445_v52, %v444_v51  ;;  %v1217_v51 = vmov 8   ;;  %v1218_v52 = vmov 9  }
 0x1d0   :  { %v447_v54 = vrot.slane %v446_v53, 2 }
 0x1d2   :  { %v448_v55 = vadd.f32 %v447_v54, %v446_v53  ;;  %v1219_v53 = vmov 10   ;;  %v527_v54 = vpop.permute.xlu1 %526 }
 0x1d4   :  { %v449_v56 = vrot.slane %v448_v55, 1 }
 0x1d6   :  { %v450_v57 = vadd.f32 %v449_v56, %v448_v55  ;;  %v523_v55 = vpop.permute.xlu0 %522 }
 0x1d8   :  { %v452_v58 = vmul.f32 0.03125, %v450_v57 }
 0x1da   :  { %v455_v59 = vsub.f32 %v432_v48, %v452_v58  ;;  %v456_v60 = vsub.f32 %v433_v49, %v452_v58  ;;  %v453_v61 = vsub.f32 %v430_v43, %v452_v58  ;;  %v454_v62 = vsub.f32 %v431_v41, %v452_v58  ;;  %v438_v48 = vld [vmem:[%s1409_s5] sm:$0xff] }
 0x1db   :  { %v1215_v49 = vmov 6  }
 0x1dc   :  { %v457_v63 = vmul.f32 %v453_v61, %v453_v61  ;;  %v458_v0 = vmul.f32 %v454_v62, %v454_v62  ;;  %v459_v1 = vmul.f32 %v455_v59, %v455_v59  ;;  %v460_v3 = vmul.f32 %v456_v60, %v456_v60  ;;  %1138 = vset.pattern.permute.xlu1 %v1215_v49 }
 0x1dd   :  { %1139 = vset.pattern.permute.xlu0 %v1215_v49  ;;  %714 = vperm.xlu1 %1138, %v1274_v15  }
 0x1de   :  { %v461_v2 = vadd.f32 %v458_v0, %v457_v63  ;;  %718 = vperm.xlu0 %1139, %v1286_v18   ;;  %v535_v63 = vpop.permute.xlu0 %534 }
 0x1e0   :  { %v462_v4 = vadd.f32 %v461_v2, %v459_v1 }
 0x1e1   :  { %722 = vperm.xlu1 %1138, %v1279_v16  }
 0x1e2   :  { %v463_v5 = vadd.f32 %v462_v4, %v460_v3  ;;  %1140 = vset.pattern.permute.xlu0 %v1216_v50 }
 0x1e3   :  { %861 = vperm.xlu0 %1140, %v1274_v15  }
 0x1e4   :  { %v464_v6 = vrot.slane %v463_v5, 4 }
 0x1e5   :  { %726 = vperm.xlu1 %1138, %v1291_v19  }
 0x1e6   :  { %v465_v7 = vadd.f32 %v464_v6, %v463_v5 }
 0x1e7   :  { %1142 = vset.pattern.permute.xlu0 %v1217_v51 }
 0x1e8   :  { %v466_v9 = vrot.slane %v465_v7, 2  ;;  %881 = vperm.xlu0 %1142, %v1274_v15  }
 0x1e9   :  { %1141 = vset.pattern.permute.xlu1 %v1216_v50 }
 0x1ea   :  { %v467_v10 = vadd.f32 %v466_v9, %v465_v7  ;;  %865 = vperm.xlu1 %1141, %v1286_v18  }
 0x1ec   :  { %v468_v11 = vrot.slane %v467_v10, 1  ;;  %889 = vperm.xlu0 %1142, %v1279_v16  }
 0x1ee   :  { %v469_v12 = vadd.f32 %v468_v11, %v467_v10  ;;  %869 = vperm.xlu1 %1141, %v1279_v16  }
 0x1f0   :  { %v470_v14 = vmul.f32 0.03125, %v469_v12  ;;  %1146 = vset.pattern.permute.xlu0 %v1218_v52 }
 0x1f1   :  { %905 = vperm.xlu0 %1146, %v1274_v15  }
 0x1f2   :  { %v471_v17 = vadd.f32 1e-05, %v470_v14  ;;  %1143 = vset.pattern.permute.xlu1 %v1217_v51 }
 0x1f3   :  { %885 = vperm.xlu1 %1143, %v1286_v18  }
 0x1f4   :  { %1150 = vrsqrt.f32 %v471_v17 }
 0x1f5   :  { %917 = vperm.xlu0 %1146, %v1291_v19  }
 0x1f7   :  { %1144 = vset.pattern.permute.xlu1 %v1216_v50 }
 0x1f8   :  { %873 = vperm.xlu1 %1144, %v1291_v19  }
 0x1f9   :  { %1149 = vset.pattern.permute.xlu0 %v1219_v53 }
 0x1fc   :  { %1145 = vset.pattern.permute.xlu1 %v1217_v51 }
 0x1fd   :  { %893 = vperm.xlu1 %1145, %v1291_v19  }
 0x1fe   :  { %v1151_v24 = vpop.eup %1150 }
 0x1ff   :  { %v474_v25 = vmul.f32 %v1151_v24, %v454_v62  ;;  %v475_v26 = vmul.f32 %v1151_v24, %v455_v59  ;;  %v473_v27 = vmul.f32 %v1151_v24, %v453_v61  ;;  %v476_v28 = vmul.f32 %v1151_v24, %v456_v60  ;;  %v531_v61 = vpop.permute.xlu1 %530 }
 0x201   :  { %v494_v30 = vmul.f32 %v483_v8, %v474_v25  ;;  %v495_v31 = vmul.f32 %v487_v20, %v475_v26  ;;  %v493_v32 = vmul.f32 %v479_v21, %v473_v27  ;;  %v496_v33 = vmul.f32 %v491_v22, %v476_v28  ;;  %1147 = vset.pattern.permute.xlu1 %v1218_v52 }
 0x202   :  { %909 = vperm.xlu1 %1147, %v1286_v18  }
 0x203   :  { %v513_v35 = vadd.f32 %v499_v13, %v493_v32  ;;  %v514_v36 = vadd.f32 %v503_v23, %v494_v30  ;;  %v516_v37 = vadd.f32 %v511_v29, %v496_v33  ;;  %v515_v38 = vadd.f32 %v507_v34, %v495_v31  ;;  %v675_v33 = vpop.permute.xlu0 %674 }
 0x205   :  { %1152 = vtanh.f32 %v513_v35 }
 0x206   :  { %1154 = vtanh.f32 %v514_v36  ;;  %913 = vperm.xlu1 %1147, %v1279_v16  }
 0x207   :  { %1156 = vtanh.f32 %v516_v37  ;;  %v679_v36 = vpop.permute.xlu0 %678 }
 0x208   :  { %1158 = vtanh.f32 %v515_v38 }
 0x20a   :  { %1148 = vset.pattern.permute.xlu1 %v1219_v53 }
 0x20b   :  { %934 = vperm.xlu1 %1148, %v1274_v15   ;;  %v671_v15 = vpop.permute.xlu1 %670 }
 0x20f   :  { %v1153_v39 = vpop.eup %1152  ;;  %v691_v31 = vpop.permute.xlu1 %690 }
 0x210   :  { %v1155_v40 = vpop.eup %1154 }
 0x211   :  { %v1157_v41 = vpop.eup %1156  ;;  %v1085_v42 = vpack.c.bf16 %v1155_v40, %v1153_v39 }
 0x212   :  { %v1159_v43 = vpop.eup %1158 }
 0x213   :  { %1086 = vmatprep.subr.bf16.mxu1 %v1085_v42  ;;  %v1089_v44 = vpack.c.bf16 %v1157_v41, %v1159_v43  ;;  %v695_v34 = vpop.permute.xlu1 %694 }
 0x214   :  { %1088 = vmatpush3.bf16.msra.mxu1 %v1085_v42 }
 0x215   :  { %1090 = vmatprep.subr.bf16.mxu1 %v1089_v44 }
 0x217   :  { %v683_v35 = vpop.permute.xlu1 %682 }
 0x218   :  { %1092 = vmatpush3.bf16.msra.mxu1 %v1089_v44 }
 0x21b   :  { %1060 = vmatmul.mubr.msk.f32.vlgmr.msra.gmra.mrb[2].mxu1 %vm537_vm11, %v435_v45  ;;  %v703_v42 = vpop.permute.xlu1 %702 }
 0x21c   :  { %1062 = vmatprep.mubr.msk.f32.mxu1 %vm537_vm11, %v436_v46 }
 0x21f   :  { %1063 = vmatmul.mubr.msk.f32.gmra.mrb[4].mxu1 %vm537_vm11, %v437_v47  ;;  %v699_v47 = vpop.permute.xlu0 %698 }
 0x220   :  { %1073 = vmatprep.mubr.msk.f32.mxu1 %vm537_vm11, %v438_v48 }
 0x2ee   :  { %v1061_v56 = vpop.f32.mrb[2].mxu1 }
 0x2ef   :  { %v622_v57 = vadd.f32 %v1061_v56, %v527_v54  ;;  %v616_v58 = vpop.f32.mrb[3].mxu1 }
 0x2f0   :  { %v617_v59 = vadd.f32 %v616_v58, %v523_v55  ;;  %v439_v58 = vld [vmem:[%s1409_s5 + $0x8] sm:$0xff] }
 0x2f2   :  { %v635_v60 = vadd.f32 %v622_v57, %v617_v59  ;;  %v1064_v62 = vpop.f32.mrb[4].mxu1 }
 0x2f3   :  { %v626_v0 = vpop.f32.mrb[5].mxu1  ;;  %v632_v2 = vadd.f32 %v1064_v62, %v535_v63  ;;  %v719_v62 = vpop.permute.xlu0 %718 }
 0x2f4   :  { %v627_v1 = vadd.f32 %v626_v0, %v531_v61  ;;  %v715_v61 = vpop.permute.xlu1 %714 }
 0x2f6   :  { %v636_v3 = vadd.f32 %v635_v60, %v627_v1  ;;  %v441_v60 = vld [vmem:[%s1409_s5 + $0x18] sm:$0xff] }
 0x2f8   :  { %v637_v4 = vadd.f32 %v636_v3, %v632_v2  ;;  %v723_v0 = vpop.permute.xlu1 %722 }
 0x2fa   :  { %v638_v5 = vrot.slane %v637_v4, 4 }
 0x2fc   :  { %v639_v6 = vadd.f32 %v638_v5, %v637_v4 }
 0x2fe   :  { %v640_v19 = vrot.slane %v639_v6, 2 }
 0x300   :  { %v641_v7 = vadd.f32 %v640_v19, %v639_v6 }
 0x302   :  { %v642_v8 = vrot.slane %v641_v7, 1 }
 0x304   :  { %v643_v9 = vadd.f32 %v642_v8, %v641_v7  ;;  %v727_v7 = vpop.permute.xlu1 %726 }
 0x306   :  { %v644_v10 = vmul.f32 0.03125, %v643_v9 }
 0x308   :  { %v647_v11 = vsub.f32 %v627_v1, %v644_v10  ;;  %v648_v12 = vsub.f32 %v632_v2, %v644_v10  ;;  %v645_v13 = vsub.f32 %v617_v59, %v644_v10  ;;  %v646_v14 = vsub.f32 %v622_v57, %v644_v10  ;;  %v440_v59 = vld [vmem:[%s1409_s5 + $0x10] sm:$0xff]  ;;  %s1220_s5 = smov [#allocation2]  }
 0x309   :  { %s945_s13 = sshll.u32 %s1220_s5, 4  ;;  %s946_s13 = int_to_ptr.vmem [resolvable:$true] %s945_s13 }
 0x30a   :  { %v649_v18 = vmul.f32 %v645_v13, %v645_v13  ;;  %v650_v17 = vmul.f32 %v646_v14, %v646_v14  ;;  %v651_v20 = vmul.f32 %v647_v11, %v647_v11  ;;  %v652_v22 = vmul.f32 %v648_v12, %v648_v12  ;;  %s1180_s14 = scalar_lea.vmem %s946_s13, 16  ;;  %s1184_s15 = scalar_lea.vmem %s946_s13, 32 }
 0x30b   :  { %p1181_p0 = scmp.ne.s32.totalorder %s946_s13, %s1180_s14  ;;  %p1185_p1 = scmp.lt.s32.totalorder %s946_s13, %s946_s13 }
 0x30c   :  { %v653_v21 = vadd.f32 %v650_v17, %v649_v18  ;;  %p1186_p2 = scmp.lt.s32.totalorder %s1184_s15, %s1180_s14 }
 0x30e   :  { %v654_v16 = vadd.f32 %v653_v21, %v651_v20  ;;  %p1187_p3 = por %p1186_p2, %p1185_p1 }
 0x310   :  { %v655_v23 = vadd.f32 %v654_v16, %v652_v22  ;;  %p1188_p4 = pnand %p1187_p3, %p1181_p0 }
 0x312   :  { %v656_v24 = vrot.slane %v655_v23, 4 }
 0x314   :  { %v657_v25 = vadd.f32 %v656_v24, %v655_v23 }
 0x316   :  { %v658_v26 = vrot.slane %v657_v25, 2 }
 0x318   :  { %v659_v27 = vadd.f32 %v658_v26, %v657_v25 }
 0x31a   :  { %v660_v28 = vrot.slane %v659_v27, 1 }
 0x31c   :  { %v661_v29 = vadd.f32 %v660_v28, %v659_v27 }
 0x31e   :  { %v662_v30 = vmul.f32 0.03125, %v661_v29 }
 0x320   :  { %v663_v32 = vadd.f32 1e-05, %v662_v30 }
 0x322   :  { %1160 = vrsqrt.f32 %v663_v32 }
 0x32c   :  { %v1161_v37 = vpop.eup %1160 }
 0x32d   :  { %v665_v38 = vmul.f32 %v1161_v37, %v645_v13  ;;  %v666_v39 = vmul.f32 %v1161_v37, %v646_v14  ;;  %v668_v40 = vmul.f32 %v1161_v37, %v648_v12  ;;  %v667_v41 = vmul.f32 %v1161_v37, %v647_v11 }
 0x32f   :  { %v685_v43 = vmul.f32 %v671_v15, %v665_v38  ;;  %v686_v44 = vmul.f32 %v675_v33, %v666_v39  ;;  %v688_v45 = vmul.f32 %v683_v35, %v668_v40  ;;  %v687_v46 = vmul.f32 %v679_v36, %v667_v41  ;;  %v866_v33 = vpop.permute.xlu1 %865  ;;  %v862_v41 = vpop.permute.xlu0 %861 }
 0x331   :  { %v705_v48 = vadd.f32 %v691_v31, %v685_v43  ;;  %v706_v49 = vadd.f32 %v695_v34, %v686_v44  ;;  %v708_v50 = vadd.f32 %v703_v42, %v688_v45  ;;  %v707_v51 = vadd.f32 %v699_v47, %v687_v46 }
 0x333   :  { %1162 = vtanh.f32 %v705_v48  ;;  %v870_v38 = vpop.permute.xlu1 %869  ;;  %v882_v43 = vpop.permute.xlu0 %881 }
 0x334   :  { %1164 = vtanh.f32 %v706_v49 }
 0x335   :  { %1166 = vtanh.f32 %v708_v50 }
 0x336   :  { %1168 = vtanh.f32 %v707_v51 }
 0x337   :  { %v886_v40 = vpop.permute.xlu1 %885 }
 0x33b   :  { %v874_v42 = vpop.permute.xlu1 %873 }
 0x33d   :  { %v1163_v52 = vpop.eup %1162 }
 0x33e   :  { %v1165_v53 = vpop.eup %1164 }
 0x33f   :  { %v1167_v54 = vpop.eup %1166  ;;  %v1093_v55 = vpack.c.bf16 %v1165_v53, %v1163_v52  ;;  %v894_v49 = vpop.permute.xlu1 %893 }
 0x340   :  { %v1169_v56 = vpop.eup %1168 }
 0x341   :  { %1094 = vmatprep.subr.bf16.mxu1 %v1093_v55  ;;  %v1097_v57 = vpack.c.bf16 %v1167_v54, %v1169_v56 }
 0x342   :  { %1096 = vmatpush3.bf16.msra.mxu1 %v1093_v55 }
 0x343   :  { %1098 = vmatprep.subr.bf16.mxu1 %v1097_v57 }
 0x346   :  { %1100 = vmatpush3.bf16.msra.mxu1 %v1097_v57  ;;  %v890_v57 = vpop.permute.xlu0 %889 }
 0x349   :  { %1074 = vmatmul.mubr.msk.f32.vlgmr.msra.gmra.mrb[6].mxu1 %vm537_vm11, %v439_v58 }
 0x34a   :  { %1076 = vmatprep.mubr.msk.f32.mxu1 %vm537_vm11, %v440_v59  ;;  %v910_v59 = vpop.permute.xlu1 %909 }
 0x34d   :  { %1077 = vmatmul.mubr.msk.f32.gmra.mrb[8].mxu1 %vm537_vm11, %v441_v60  ;;  %v906_v60 = vpop.permute.xlu0 %905 }
 0x41c   :  { %v1075_v63 = vpop.f32.mrb[6].mxu1 }
 0x41d   :  { %v813_v1 = vadd.f32 %v1075_v63, %v719_v62  ;;  %v807_v2 = vpop.f32.mrb[7].mxu1 }
 0x41e   :  { %v808_v3 = vadd.f32 %v807_v2, %v715_v61 }
 0x420   :  { %v826_v4 = vadd.f32 %v813_v1, %v808_v3  ;;  %v1078_v5 = vpop.f32.mrb[8].mxu1 }
 0x421   :  { %v817_v6 = vpop.f32.mrb[9].mxu1  ;;  %v823_v8 = vadd.f32 %v1078_v5, %v727_v7 }
 0x422   :  { %v818_v19 = vadd.f32 %v817_v6, %v723_v0 }
 0x424   :  { %v827_v9 = vadd.f32 %v826_v4, %v818_v19  ;;  %v918_v4 = vpop.permute.xlu0 %917 }
 0x426   :  { %v828_v10 = vadd.f32 %v827_v9, %v823_v8 }
 0x428   :  { %v829_v11 = vrot.slane %v828_v10, 4 }
 0x42a   :  { %v830_v12 = vadd.f32 %v829_v11, %v828_v10 }
 0x42c   :  { %v831_v13 = vrot.slane %v830_v12, 2 }
 0x42e   :  { %v832_v14 = vadd.f32 %v831_v13, %v830_v12 }
 0x430   :  { %v833_v18 = vrot.slane %v832_v14, 1 }
 0x432   :  { %v834_v17 = vadd.f32 %v833_v18, %v832_v14 }
 0x434   :  { %v835_v20 = vmul.f32 0.03125, %v834_v17 }
 0x436   :  { %v838_v21 = vsub.f32 %v818_v19, %v835_v20  ;;  %v839_v22 = vsub.f32 %v823_v8, %v835_v20  ;;  %v836_v16 = vsub.f32 %v808_v3, %v835_v20  ;;  %v837_v23 = vsub.f32 %v813_v1, %v835_v20  ;;  %v914_v3 = vpop.permute.xlu1 %913 }
 0x438   :  { %v840_v24 = vmul.f32 %v836_v16, %v836_v16  ;;  %v841_v25 = vmul.f32 %v837_v23, %v837_v23  ;;  %v842_v26 = vmul.f32 %v838_v21, %v838_v21  ;;  %v843_v27 = vmul.f32 %v839_v22, %v839_v22 }
 0x43a   :  { %v844_v15 = vadd.f32 %v841_v25, %v840_v24  ;;  %v935_v14 = vpop.permute.xlu1 %934 }
 0x43c   :  { %v845_v28 = vadd.f32 %v844_v15, %v842_v26 }
 0x43e   :  { %v846_v29 = vadd.f32 %v845_v28, %v843_v27 }
 0x440   :  { %v847_v30 = vrot.slane %v846_v29, 4 }
 0x442   :  { %v848_v31 = vadd.f32 %v847_v30, %v846_v29 }
 0x444   :  { %v849_v32 = vrot.slane %v848_v31, 2 }
 0x446   :  { %v850_v34 = vadd.f32 %v849_v32, %v848_v31 }
 0x448   :  { %v851_v35 = vrot.slane %v850_v34, 1 }
 0x44a   :  { %v852_v36 = vadd.f32 %v851_v35, %v850_v34 }
 0x44c   :  { %v853_v37 = vmul.f32 0.03125, %v852_v36 }
 0x44e   :  { %v854_v39 = vadd.f32 1e-05, %v853_v37 }
 0x450   :  { %1170 = vrsqrt.f32 %v854_v39 }
 0x45a   :  { %v1171_v44 = vpop.eup %1170 }
 0x45b   :  { %v857_v45 = vmul.f32 %v1171_v44, %v837_v23  ;;  %v858_v46 = vmul.f32 %v1171_v44, %v838_v21  ;;  %v856_v47 = vmul.f32 %v1171_v44, %v836_v16  ;;  %v859_v48 = vmul.f32 %v1171_v44, %v839_v22 }
 0x45d   :  { %v877_v50 = vmul.f32 %v866_v33, %v857_v45  ;;  %v878_v51 = vmul.f32 %v870_v38, %v858_v46  ;;  %v876_v52 = vmul.f32 %v862_v41, %v856_v47  ;;  %v879_v53 = vmul.f32 %v874_v42, %v859_v48 }
 0x45f   :  { %v897_v54 = vadd.f32 %v886_v40, %v877_v50  ;;  %v896_v55 = vadd.f32 %v882_v43, %v876_v52  ;;  %v899_v56 = vadd.f32 %v894_v49, %v879_v53  ;;  %v898_v58 = vadd.f32 %v890_v57, %v878_v51 }
 0x461   :  { %1172 = vtanh.f32 %v897_v54 }
 0x462   :  { %1174 = vtanh.f32 %v896_v55 }
 0x463   :  { %1176 = vtanh.f32 %v899_v56 }
 0x464   :  { %1178 = vtanh.f32 %v898_v58 }
 0x46b   :  { %v1173_v61 = vpop.eup %1172 }
 0x46c   :  { %v1175_v62 = vpop.eup %1174  ;;  %v921_v63 = vmul.f32 %v1173_v61, %v910_v59 }
 0x46d   :  { %v1177_v0 = vpop.eup %1176  ;;  %v920_v1 = vmul.f32 %v1175_v62, %v906_v60 }
 0x46e   :  { %v1179_v2 = vpop.eup %1178  ;;  %v923_v7 = vmul.f32 %v1177_v0, %v918_v4 }
 0x46f   :  { %v924_v5 = vadd.f32 %v921_v63, %v920_v1  ;;  %v922_v6 = vmul.f32 %v1179_v2, %v914_v3 }
 0x471   :  { %v925_v19 = vadd.f32 %v924_v5, %v922_v6 }
 0x473   :  { %v926_v8 = vadd.f32 %v925_v19, %v923_v7 }
 0x475   :  { %v927_v9 = vrot.slane %v926_v8, 4 }
 0x477   :  { %v928_v10 = vadd.f32 %v927_v9, %v926_v8 }
 0x479   :  { %v929_v11 = vrot.slane %v928_v10, 2 }
 0x47b   :  { %v930_v12 = vadd.f32 %v929_v11, %v928_v10 }
 0x47d   :  { %v931_v13 = vrot.slane %v930_v12, 1 }
 0x47f   :  { %v932_v18 = vadd.f32 %v931_v13, %v930_v12 }
 0x481   :  { %v937_v17 = vadd.f32 %v935_v14, %v932_v18 }
 0x483   :  { %938 = vst [vmem:[#allocation2] sm:$0x1] %v937_v17 }
 0x484   :  { %1191 = shalt.err (!%p1188_p4)
}
 0x485   :  { %s1192_s18 = scalar_lea.hbm %s1411_s7, 16 }
 0x486   :  { %p1193_p5 = scmp.ne.s32.totalorder %s1411_s7, %s1192_s18  ;;  %p1196_p6 = scmp.lt.u32.totalorder %s1192_s18, %s1411_s7 }
 0x488   :  { %p1198_p7 = pnand %p1196_p6, %p1193_p5 }
 0x48a   :  { %1201 = shalt.err (!%p1198_p7)
}
 0x48b   :  { %948 = dma.vmem_to_hbm [thread:$0]  %s946_s13, 16, %s1411_s7, [#allocation3]  }
 0x48c   :  { %1202 = dma.done.wait [#allocation3], 16  }
 0x48d   :  { %1203 = vsyncadd [#allocation3], 4294967280 }
 0x48e   :  { %952 = vsyncpa [#allocation3], 1 }

</bundles_post_ra>
